<compile_context>
chip_gen: v5e
topology: v5e:2x2
jax: 0.10.0
libtpu: 0.0.40
codegen_flags: <defaults>
</compile_context>

<pallas_src>
import functools

import jax
import jax.numpy as jnp
from jax.experimental import pallas as pl
from jax.experimental.pallas import tpu as pltpu


def _make_policy_kernel(action_dim):
    def kernel(obs_ref, w1_ref, w2_ref, w3_ref, bias_ref, act_ref, val_ref):
        out_w = w3_ref.shape[1]

        # Biases stay f32 regardless of the MXU operand dtype.
        b = bias_ref[...]
        b1 = b[0:1, :]
        b2 = b[1:2, :]
        b3 = b[2:3, :out_w]

        # obs already arrives in the matmul dtype (cast once in the wrapper).
        x = obs_ref[...]
        h = jnp.dot(x, w1_ref[...], preferred_element_type=jnp.float32) + b1
        h = jnp.tanh(h).astype(w2_ref.dtype)
        h = jnp.dot(h, w2_ref[...], preferred_element_type=jnp.float32) + b2
        h = jnp.tanh(h).astype(w3_ref.dtype)
        y = jnp.dot(h, w3_ref[...], preferred_element_type=jnp.float32) + b3

        act_ref[...] = y[:, :action_dim].astype(act_ref.dtype)
        val_ref[...] = y[:, action_dim:action_dim + 1].astype(val_ref.dtype)

    return kernel


def pack_params(p, matmul_dtype=jnp.bfloat16):
    """Fuse the two MLP branches into lane-dense weights + one f32 bias slab."""
    obs_dim, hidden = p["w1p"].shape
    action_dim = p["wa"].shape[1]
    fused = 2 * hidden                                   # 128 for hidden=64
    out_w = max(8, ((action_dim + 1 + 7) // 8) * 8)      # padded head width (8)

    w1 = jnp.concatenate([p["w1p"], p["w1v"]], axis=1)                  # (obs, fused)
    w2 = jnp.zeros((fused, fused), jnp.float32)
    w2 = w2.at[:hidden, :hidden].set(p["w2p"])
    w2 = w2.at[hidden:, hidden:].set(p["w2v"])                          # block-diag
    w3 = jnp.zeros((fused, out_w), jnp.float32)
    w3 = w3.at[:hidden, :action_dim].set(p["wa"])
    w3 = w3.at[hidden:, action_dim:action_dim + 1].set(p["wv"])         # 8-wide head

    bias = jnp.zeros((3, fused), jnp.float32)
    bias = bias.at[0, :hidden].set(p["b1p"][0])
    bias = bias.at[0, hidden:].set(p["b1v"][0])
    bias = bias.at[1, :hidden].set(p["b2p"][0])
    bias = bias.at[1, hidden:].set(p["b2v"][0])
    bias = bias.at[2, :action_dim].set(p["ba"][0])
    bias = bias.at[2, action_dim:action_dim + 1].set(p["bv"][0])

    return dict(
        w1=w1.astype(matmul_dtype),
        w2=w2.astype(matmul_dtype),
        w3=w3.astype(matmul_dtype),
        bias=bias,                      # f32
        action_dim=action_dim,
    )


@functools.partial(jax.jit, static_argnames=("action_dim", "tile_b"))
def _fused_forward(observation, w1, w2, w3, bias, *, action_dim, tile_b):
    B, obs_dim = observation.shape

    # Cast the observation once (no-op for an f32 weight pack); halves obs DMA
    # on the bf16 path and removes per-tile VPU cast work in the kernel.
    obs = observation.astype(w1.dtype)

    # Batch tile: as large as requested, but guarantee >= 2 grid steps for any
    # non-trivial batch so a megacore chip (v7x) can shard the batch axis.
    tb = min(tile_b, B)
    if B > 16:
        half = ((-(-B // 2)) + 7) // 8 * 8          # round_up(ceil(B/2), 8)
        tb = min(tb, half)
    if tb < B:
        tb = max(8, (tb // 8) * 8)
    grid = (pl.cdiv(B, tb),)

    obs_spec = pl.BlockSpec((tb, obs_dim), lambda i: (i, 0))
    # Weights / biases stay VMEM-resident across batch tiles (constant index_map
    # -> DMA'd once, not re-fetched per grid step).
    res = lambda a: pl.BlockSpec(a.shape, lambda i: (0, 0))
    out_specs = (
        pl.BlockSpec((tb, action_dim), lambda i: (i, 0)),
        pl.BlockSpec((tb, 1), lambda i: (i, 0)),
    )

    act, val = pl.pallas_call(
        _make_policy_kernel(action_dim),
        grid=grid,
        in_specs=[obs_spec, res(w1), res(w2), res(w3), res(bias)],
        out_specs=out_specs,
        out_shape=(
            jax.ShapeDtypeStruct((B, action_dim), jnp.float32),
            jax.ShapeDtypeStruct((B, 1), jnp.float32),
        ),
        compiler_params=pltpu.CompilerParams(
            dimension_semantics=("parallel",)),
    )(obs, w1, w2, w3, bias)

    return act, val


def onnxable_policy_forward(observation, packed, *, tile_b=4096):
    """Pallas forward: returns (action_logits, value) directly from the kernel."""
    return _fused_forward(
        observation, packed["w1"], packed["w2"], packed["w3"], packed["bias"],
        action_dim=packed["action_dim"], tile_b=tile_b)


def init_params(key, obs_dim, hidden, action_dim):
    """Deterministic synthetic parameters. Weights stored as (in, out)."""
    ks = jax.random.split(key, 12)
    scale = 0.1

    def lin(kw, kb, d_in, d_out):
        w = scale * jax.random.normal(kw, (d_in, d_out), jnp.float32)
        b = scale * jax.random.normal(kb, (1, d_out), jnp.float32)
        return w, b

    w1p, b1p = lin(ks[0], ks[1], obs_dim, hidden)
    w2p, b2p = lin(ks[2], ks[3], hidden, hidden)
    wa, ba = lin(ks[4], ks[5], hidden, action_dim)
    w1v, b1v = lin(ks[6], ks[7], obs_dim, hidden)
    w2v, b2v = lin(ks[8], ks[9], hidden, hidden)
    wv, bv = lin(ks[10], ks[11], hidden, 1)
    return dict(w1p=w1p, b1p=b1p, w2p=w2p, b2p=b2p, wa=wa, ba=ba,
                w1v=w1v, b1v=b1v, w2v=w2v, b2v=b2v, wv=wv, bv=bv)


def reference_forward(observation, p):
    """Pure-JAX reference matching the PyTorch semantics (f32)."""
    h = jnp.tanh(observation @ p["w1p"] + p["b1p"])
    h = jnp.tanh(h @ p["w2p"] + p["b2p"])
    act = h @ p["wa"] + p["ba"]
    v = jnp.tanh(observation @ p["w1v"] + p["b1v"])
    v = jnp.tanh(v @ p["w2v"] + p["b2v"])
    val = v @ p["wv"] + p["bv"]
    return act, val


if __name__ == "__main__":
    OBS_DIM, HIDDEN, ACTION_DIM = 16, 64, 4

    key = jax.random.PRNGKey(0)
    k_obs, k_obs2, k_obs3, k_params = jax.random.split(key, 4)
    params = init_params(k_params, OBS_DIM, HIDDEN, ACTION_DIM)

    # --- f32 path, tiny batch (single grid step), tight tolerance ---
    B = 8
    obs = jax.random.normal(k_obs, (B, OBS_DIM), jnp.float32)
    packed_f32 = pack_params(params, jnp.float32)
    act, val = onnxable_policy_forward(obs, packed_f32)
    jax.block_until_ready((act, val))
    act_ref, val_ref = reference_forward(obs, params)
    assert act.shape == (B, ACTION_DIM) and val.shape == (B, 1)
    assert jnp.allclose(act, act_ref, atol=1e-5, rtol=1e-5)
    assert jnp.allclose(val, val_ref, atol=1e-5, rtol=1e-5)

    # --- f32 path, multi-tile batch (batch-tiled grid, resident weights,
    #     edge clamp on the trailing tile, >=2 steps for megacore) ---
    B2 = 64
    obs2 = jax.random.normal(k_obs2, (B2, OBS_DIM), jnp.float32)
    act2, val2 = onnxable_policy_forward(obs2, packed_f32, tile_b=16)
    jax.block_until_ready((act2, val2))
    act2_ref, val2_ref = reference_forward(obs2, params)
    assert jnp.allclose(act2, act2_ref, atol=1e-5, rtol=1e-5)
    assert jnp.allclose(val2, val2_ref, atol=1e-5, rtol=1e-5)

    # --- default bf16 MXU-operand path (f32 accumulation + f32 bias/tanh),
    #     non-multiple-of-tile batch, looser tolerance ---
    B3 = 40
    obs3 = jax.random.normal(k_obs3, (B3, OBS_DIM), jnp.float32)
    packed_bf16 = pack_params(params)            # bf16 default
    act3, val3 = onnxable_policy_forward(obs3, packed_bf16)
    jax.block_until_ready((act3, val3))
    act3_ref, val3_ref = reference_forward(obs3, params)
    assert jnp.allclose(act3, act3_ref, atol=2e-2, rtol=2e-2)
    assert jnp.allclose(val3, val3_ref, atol=2e-2, rtol=2e-2)

    print("KERNEL_OK")
</pallas_src>

<mosaic_0001>
module attributes {stable_mosaic.version = 11 : i64} {
  func.func @kernel(%arg0: i32, %arg1: memref<8x16xf32, #tpu.memory_space<vmem>>, %arg2: memref<16x128xf32, #tpu.memory_space<vmem>>, %arg3: memref<128x128xf32, #tpu.memory_space<vmem>>, %arg4: memref<128x8xf32, #tpu.memory_space<vmem>>, %arg5: memref<3x128xf32, #tpu.memory_space<vmem>>, %arg6: memref<8x4xf32, #tpu.memory_space<vmem>>, %arg7: memref<8x1xf32, #tpu.memory_space<vmem>>) attributes {dimension_semantics = [#tpu.dimension_semantics<parallel>], iteration_bounds = array<i64: 1>, scalar_prefetch = 0 : i64, scratch_operands = 0 : i64, tpu.core_type = #tpu.core_type<tc>, window_params = [{transform_indices = @transform_0, window_bounds = array<i64: 8, 16>}, {pipeline_mode = #tpu.pipeline_mode<synchronous>, transform_indices = @transform_1, window_bounds = array<i64: 16, 128>}, {pipeline_mode = #tpu.pipeline_mode<synchronous>, transform_indices = @transform_2, window_bounds = array<i64: 128, 128>}, {pipeline_mode = #tpu.pipeline_mode<synchronous>, transform_indices = @transform_3, window_bounds = array<i64: 128, 8>}, {pipeline_mode = #tpu.pipeline_mode<synchronous>, transform_indices = @transform_4, window_bounds = array<i64: 3, 128>}, {transform_indices = @transform_5, window_bounds = array<i64: 8, 4>}, {transform_indices = @transform_6, window_bounds = array<i64: 8, 1>}]} {
    %c0 = arith.constant 0 : index
    %c0_0 = arith.constant 0 : index
    %0 = vector.load %arg5[%c0, %c0_0] : memref<3x128xf32, #tpu.memory_space<vmem>>, vector<3x128xf32>
    %1 = vector.extract_strided_slice %0 {offsets = [0, 0], sizes = [1, 128], strides = [1, 1]} : vector<3x128xf32> to vector<1x128xf32>
    %2 = vector.extract_strided_slice %0 {offsets = [1, 0], sizes = [1, 128], strides = [1, 1]} : vector<3x128xf32> to vector<1x128xf32>
    %3 = vector.extract_strided_slice %0 {offsets = [2, 0], sizes = [1, 8], strides = [1, 1]} : vector<3x128xf32> to vector<1x8xf32>
    %c0_1 = arith.constant 0 : index
    %c0_2 = arith.constant 0 : index
    %4 = vector.load %arg1[%c0_1, %c0_2] : memref<8x16xf32, #tpu.memory_space<vmem>>, vector<8x16xf32>
    %c0_3 = arith.constant 0 : index
    %c0_4 = arith.constant 0 : index
    %5 = vector.load %arg2[%c0_3, %c0_4] : memref<16x128xf32, #tpu.memory_space<vmem>>, vector<16x128xf32>
    %cst = arith.constant dense<0.000000e+00> : vector<8x128xf32>
    %6 = tpu.matmul %4, %5, %cst {dimension_numbers = #tpu.dot_dimension_numbers<[1], [0], [0], [1], [0, 0, 1, 1], [], []>} : vector<8x16xf32>, vector<16x128xf32>, vector<8x128xf32> -> vector<8x128xf32>
    %7 = vector.broadcast %1 : vector<1x128xf32> to vector<8x128xf32>
    %8 = arith.addf %6, %7 : vector<8x128xf32>
    %9 = math.tanh %8 : vector<8x128xf32>
    %c0_5 = arith.constant 0 : index
    %c0_6 = arith.constant 0 : index
    %10 = vector.load %arg3[%c0_5, %c0_6] : memref<128x128xf32, #tpu.memory_space<vmem>>, vector<128x128xf32>
    %cst_7 = arith.constant dense<0.000000e+00> : vector<8x128xf32>
    %11 = tpu.matmul %9, %10, %cst_7 {dimension_numbers = #tpu.dot_dimension_numbers<[1], [0], [0], [1], [0, 0, 1, 1], [], []>} : vector<8x128xf32>, vector<128x128xf32>, vector<8x128xf32> -> vector<8x128xf32>
    %12 = vector.broadcast %2 : vector<1x128xf32> to vector<8x128xf32>
    %13 = arith.addf %11, %12 : vector<8x128xf32>
    %14 = math.tanh %13 : vector<8x128xf32>
    %c0_8 = arith.constant 0 : index
    %c0_9 = arith.constant 0 : index
    %15 = vector.load %arg4[%c0_8, %c0_9] : memref<128x8xf32, #tpu.memory_space<vmem>>, vector<128x8xf32>
    %cst_10 = arith.constant dense<0.000000e+00> : vector<8x8xf32>
    %16 = tpu.matmul %14, %15, %cst_10 {dimension_numbers = #tpu.dot_dimension_numbers<[1], [0], [0], [1], [0, 0, 1, 1], [], []>} : vector<8x128xf32>, vector<128x8xf32>, vector<8x8xf32> -> vector<8x8xf32>
    %17 = vector.broadcast %3 : vector<1x8xf32> to vector<8x8xf32>
    %18 = arith.addf %16, %17 : vector<8x8xf32>
    %19 = vector.extract_strided_slice %18 {offsets = [0, 0], sizes = [8, 4], strides = [1, 1]} : vector<8x8xf32> to vector<8x4xf32>
    %c0_11 = arith.constant 0 : index
    %c0_12 = arith.constant 0 : index
    %20 = vector.load %arg6[%c0_11, %c0_12] : memref<8x4xf32, #tpu.memory_space<vmem>>, vector<8x4xf32>
    tpu.vector_store %arg6[%c0_11, %c0_12], %19 {strides = array<i32>} : memref<8x4xf32, #tpu.memory_space<vmem>>, vector<8x4xf32>,
    %21 = vector.extract_strided_slice %18 {offsets = [0, 4], sizes = [8, 1], strides = [1, 1]} : vector<8x8xf32> to vector<8x1xf32>
    %c0_13 = arith.constant 0 : index
    %c0_14 = arith.constant 0 : index
    %22 = vector.load %arg7[%c0_13, %c0_14] : memref<8x1xf32, #tpu.memory_space<vmem>>, vector<8x1xf32>
    tpu.vector_store %arg7[%c0_13, %c0_14], %21 {strides = array<i32>} : memref<8x1xf32, #tpu.memory_space<vmem>>, vector<8x1xf32>,
    return
  }
  func.func @transform_0(%arg0: i32) -> (i32, i32) {
    %c0_i32 = arith.constant 0 : i32
    %c0_i32_0 = arith.constant 0 : i32
    return %arg0, %c0_i32 : i32, i32
  }
  func.func @transform_1(%arg0: i32) -> (i32, i32) {
    %c0_i32 = arith.constant 0 : i32
    %c0_i32_0 = arith.constant 0 : i32
    %c0_i32_1 = arith.constant 0 : i32
    return %c0_i32, %c0_i32_0 : i32, i32
  }
  func.func @transform_2(%arg0: i32) -> (i32, i32) {
    %c0_i32 = arith.constant 0 : i32
    %c0_i32_0 = arith.constant 0 : i32
    %c0_i32_1 = arith.constant 0 : i32
    return %c0_i32, %c0_i32_0 : i32, i32
  }
  func.func @transform_3(%arg0: i32) -> (i32, i32) {
    %c0_i32 = arith.constant 0 : i32
    %c0_i32_0 = arith.constant 0 : i32
    %c0_i32_1 = arith.constant 0 : i32
    return %c0_i32, %c0_i32_0 : i32, i32
  }
  func.func @transform_4(%arg0: i32) -> (i32, i32) {
    %c0_i32 = arith.constant 0 : i32
    %c0_i32_0 = arith.constant 0 : i32
    %c0_i32_1 = arith.constant 0 : i32
    return %c0_i32, %c0_i32_0 : i32, i32
  }
  func.func @transform_5(%arg0: i32) -> (i32, i32) {
    %c0_i32 = arith.constant 0 : i32
    %c0_i32_0 = arith.constant 0 : i32
    return %arg0, %c0_i32 : i32, i32
  }
  func.func @transform_6(%arg0: i32) -> (i32, i32) {
    %c0_i32 = arith.constant 0 : i32
    %c0_i32_0 = arith.constant 0 : i32
    return %arg0, %c0_i32 : i32, i32
  }
}

</mosaic_0001>

<bundles_post_ra>
// kernel: _fused_forward.1
= control target key start
LH: loop header
LB: loop body
LE: loop exit
PB: predicated region body
PF: predicated region fallthrough
CT: control target
= control target key end

     0   :  { %12 = vsyncpa [#allocation3], 0  ;;  %s388_s0 = inlined_call_operand.vmem [shape: f32[8,16], index: 0, kind: input, shape index: {}]   ;;  %s389_s1 = inlined_call_operand.hbm [shape: f32[16,128], index: 1, kind: input, shape index: {}]   ;;  %s390_s2 = inlined_call_operand.vmem [shape: f32[128,128], index: 2, kind: input, shape index: {}]   ;;  %s391_s3 = inlined_call_operand.vmem [shape: f32[128,8], index: 3, kind: input, shape index: {}]   ;;  %s392_s4 = inlined_call_operand.hbm [shape: f32[3,128], index: 4, kind: input, shape index: {}]   ;;  %s393_s5 = inlined_call_operand.vmem [shape: f32[8,4], index: 5, kind: output, shape index: {0}]   ;;  %s394_s6 = inlined_call_operand.vmem [shape: f32[8,1], index: 6, kind: output, shape index: {1}]  }
   0x1   :  { %s20_s23 = sshll.u32 %s389_s1, 4  ;;  %s21_s23 = int_to_ptr.hbm [resolvable:$true] %s20_s23 }
   0x2   :  { %13 = vsyncpa [#allocation5], 0  ;;  %s237_s24 = smov [#allocation2]   ;;  %s38_s28 = sshll.u32 %s392_s4, 4  ;;  %s39_s28 = int_to_ptr.hbm [resolvable:$true] %s38_s28 }
   0x3   :  { %s22_s25 = sshll.u32 %s237_s24, 4  ;;  %s238_s29 = smov 128   ;;  %s23_s25 = int_to_ptr.vmem [resolvable:$true] %s22_s25 }
   0x4   :  { %s239_s30 = smov 8   ;;  %s240_s7 = smov [#allocation4]  }
   0x5   :  { %28 = dma.hbm_to_vmem [thread:$0]  %s21_s23, 256, %s23_s25, [#allocation3], %s238_s29, %s238_s29, %s239_s30  }
   0x6   :  { %s40_s8 = sshll.u32 %s240_s7, 4  ;;  %s41_s8 = int_to_ptr.vmem [resolvable:$true] %s40_s8 }
   0x7   :  { %43 = dma.hbm_to_vmem [thread:$0]  %s39_s28, 64, %s41_s8, [#allocation5]  }
   0x8   :  { %233 = dma.done.wait [#allocation3], 256  }
   0x9   :  { %234 = vsyncadd [#allocation3], 4294967040 }
   0xa   :  { %235 = dma.done.wait [#allocation5], 64  }
   0xb   :  { %236 = vsyncadd [#allocation5], 4294967232  ;;  %v55_v0 = vld [vmem:[#allocation2 + $0x8] sm:$0xff]  ;;  %v54_v1 = vld [vmem:[#allocation2] sm:$0xff]  ;;  %vm57_vm0 = vcmask 130048   ;;  %vm157_vm1 = vcmask 31744  }
   0xc   :  { %75 = vmatpush.msra.mxu0 %v55_v0  ;;  %v53_v2 = vld [vmem:[%s388_s0] sm:$0xff]  ;;  %v97_v3 = vld [vmem:[%s390_s2 + $0x78] sm:$0xff]  ;;  %v96_v4 = vld [vmem:[%s390_s2 + $0x70] sm:$0xff]  ;;  %s241_s19 = smov 124   ;;  %vm163_vm2 = vcmask 7168  }
   0xd   :  { %99 = vmatpush.msra.mxu1 %v97_v3  ;;  %v95_v5 = vld [vmem:[%s390_s2 + $0x68] sm:$0xff]  ;;  %v94_v6 = vld [vmem:[%s390_s2 + $0x60] sm:$0xff]  ;;  %v93_v7 = vld [vmem:[%s390_s2 + $0x58] sm:$0xff] }
   0xe   :  { %76 = vmatpush.msra.mxu0 %v54_v1  ;;  %v92_v8 = vld [vmem:[%s390_s2 + $0x50] sm:$0xff]  ;;  %v91_v9 = vld [vmem:[%s390_s2 + $0x48] sm:$0xff]  ;;  %v90_v10 = vld [vmem:[%s390_s2 + $0x40] sm:$0xff] }
   0xf   :  { %175 = vmatmul.msk.f32.vlgmr.msra.gmra.mxu0 %vm57_vm0, %v53_v2  ;;  %100 = vmatpush.msra.mxu1 %v96_v4  ;;  %v89_v11 = vld [vmem:[%s390_s2 + $0x38] sm:$0xff]  ;;  %v88_v12 = vld [vmem:[%s390_s2 + $0x30] sm:$0xff]  ;;  %v87_v13 = vld [vmem:[%s390_s2 + $0x28] sm:$0xff] }
  0x10   :  { %v86_v14 = vld [vmem:[%s390_s2 + $0x20] sm:$0xff]  ;;  %v85_v15 = vld [vmem:[%s390_s2 + $0x18] sm:$0xff]  ;;  %v84_v16 = vld [vmem:[%s390_s2 + $0x10] sm:$0xff] }
  0x11   :  { %101 = vmatpush.msra.mxu1 %v95_v5  ;;  %v83_v17 = vld [vmem:[%s390_s2 + $0x8] sm:$0xff]  ;;  %v82_v18 = vld [vmem:[%s390_s2] sm:$0xff]  ;;  %v135_v19 = vld [vmem:[%s391_s3 + $0x78] sm:$0xff] }
  0x12   :  { %v134_v20 = vld [vmem:[%s391_s3 + $0x70] sm:$0xff]  ;;  %137 = vmatpush.msra.mxu2 %v135_v19  ;;  %v133_v21 = vld [vmem:[%s391_s3 + $0x68] sm:$0xff]  ;;  %v132_v22 = vld [vmem:[%s391_s3 + $0x60] sm:$0xff] }
  0x13   :  { %102 = vmatpush.msra.mxu1 %v94_v6  ;;  %v131_v23 = vld [vmem:[%s391_s3 + $0x58] sm:$0xff]  ;;  %v130_v24 = vld [vmem:[%s391_s3 + $0x50] sm:$0xff]  ;;  %v129_v25 = vld [vmem:[%s391_s3 + $0x48] sm:$0xff] }
  0x14   :  { %138 = vmatpush.msra.mxu2 %v134_v20  ;;  %v128_v26 = vld [vmem:[%s391_s3 + $0x40] sm:$0xff]  ;;  %v127_v27 = vld [vmem:[%s391_s3 + $0x38] sm:$0xff]  ;;  %v52_v28 = vld [vmem:[#allocation4] sm:$0x7] }
  0x15   :  { %103 = vmatpush.msra.mxu1 %v93_v7  ;;  %v126_v29 = vld [vmem:[%s391_s3 + $0x30] sm:$0xff]  ;;  %v125_v30 = vld [vmem:[%s391_s3 + $0x28] sm:$0xff]  ;;  %v56_v31 = vperm.slane %v52_v28, 0  ;;  %v124_v35 = vld [vmem:[%s391_s3 + $0x20] sm:$0xff]  ;;  %v98_v40 = vperm.slane %v52_v28, 1  ;;  %v136_v44 = vperm.slane %v52_v28, 2 }
  0x16   :  { %139 = vmatpush.msra.mxu2 %v133_v21  ;;  %v123_v36 = vld [vmem:[%s391_s3 + $0x18] sm:$0xff]  ;;  %v122_v37 = vld [vmem:[%s391_s3 + $0x10] sm:$0xff]  ;;  %v121_v38 = vld [vmem:[%s391_s3 + $0x8] sm:$0xff] }
  0x17   :  { %104 = vmatpush.msra.mxu1 %v92_v8  ;;  %v120_v39 = vld [vmem:[%s391_s3] sm:$0xff] }
  0x18   :  { %140 = vmatpush.msra.mxu2 %v132_v22 }
  0x19   :  { %105 = vmatpush.msra.mxu1 %v91_v9 }
  0x1a   :  { %141 = vmatpush.msra.mxu2 %v131_v23 }
  0x1b   :  { %106 = vmatpush.msra.mxu1 %v90_v10 }
  0x1c   :  { %142 = vmatpush.msra.mxu2 %v130_v24 }
  0x1d   :  { %107 = vmatpush.msra.mxu1 %v89_v11 }
  0x1e   :  { %143 = vmatpush.msra.mxu2 %v129_v25 }
  0x1f   :  { %108 = vmatpush.msra.mxu1 %v88_v12 }
  0x20   :  { %144 = vmatpush.msra.mxu2 %v128_v26 }
  0x21   :  { %109 = vmatpush.msra.mxu1 %v87_v13 }
  0x22   :  { %145 = vmatpush.msra.mxu2 %v127_v27 }
  0x23   :  { %110 = vmatpush.msra.mxu1 %v86_v14 }
  0x24   :  { %146 = vmatpush.msra.mxu2 %v126_v29 }
  0x25   :  { %111 = vmatpush.msra.mxu1 %v85_v15 }
  0x26   :  { %147 = vmatpush.msra.mxu2 %v125_v30 }
  0x27   :  { %112 = vmatpush.msra.mxu1 %v84_v16 }
  0x28   :  { %148 = vmatpush.msra.mxu2 %v124_v35 }
  0x29   :  { %113 = vmatpush.msra.mxu1 %v83_v17 }
  0x2a   :  { %149 = vmatpush.msra.mxu2 %v123_v36 }
  0x2b   :  { %114 = vmatpush.msra.mxu1 %v82_v18 }
  0x2c   :  { %150 = vmatpush.msra.mxu2 %v122_v37 }
  0x2e   :  { %151 = vmatpush.msra.mxu2 %v121_v38 }
  0x30   :  { %152 = vmatpush.msra.mxu2 %v120_v39 }
  0x8c   :  { %v78_v32 = vpop.f32.mrf.mxu0 }
  0x8d   :  { %v79_v33 = vadd.f32 %v78_v32, %v56_v31 }
  0x8f   :  { %181 = vtanh.f32 %v79_v33 }
  0x95   :  { %v182_v34 = vpop.eup %181 }
  0x96   :  { %115 = vmatmul.f32.vlgmr.msra.gmra.mxu1 %v182_v34 }
 0x113   :  { %v116_v41 = vpop.f32.mrf.mxu1 }
 0x114   :  { %v117_v42 = vadd.f32 %v116_v41, %v98_v40 }
 0x116   :  { %183 = vtanh.f32 %v117_v42 }
 0x11c   :  { %v184_v43 = vpop.eup %183 }
 0x11d   :  { %153 = vmatmul.f32.vlgmr.msra.gmra.mxu2 %v184_v43 }
 0x1a0   :  { %v154_v45 = vpop.f32.mrf.mxu2 }
 0x1a1   :  { %v155_v46 = vadd.f32 %v154_v45, %v136_v44 }
 0x1a3   :  { %158 = vst.msk [vmem:[%s393_s5] sm:$0xff] %vm157_vm1, %v155_v46  ;;  %160 = vrot.lane.b32.xlu0 %v155_v46, %s241_s19 }
 0x215   :  { %v161_v47 = vpop.permute.xlu0 %160 }
 0x216   :  { %164 = vst.msk [vmem:[%s394_s6] sm:$0xff] %vm163_vm2, %v161_v47 }
 0x217   :  { %173 = vsyncpa [#allocation3], 1 }
 0x218   :  { %174 = vsyncpa [#allocation5], 1 }

</bundles_post_ra>
